<compile_context>
chip_gen: v7x
topology: tpu7x:2x2x1
jax: 0.10.0
libtpu: 0.0.40
codegen_flags: <defaults>
</compile_context>

<pallas_src>
import functools

import jax
import jax.numpy as jnp
from jax.experimental import pallas as pl
from jax.experimental.pallas import tpu as pltpu


# Single-buffer (input block + output block) budget per grid step.
# 16 MiB -> ~32 MiB double-buffered: amortizes the ~0.35 us/step overhead while
# staying well under v7x's 64 MiB per-TC physical VMEM.
_BLOCK_BUDGET_BYTES = 16 << 20


# --------------------------------------------------------------------------- #
# In-kernel helpers
# --------------------------------------------------------------------------- #
def _valid_masks(idx, col, height, width, pad):
    """Combined (row & col) in-bounds masks for every non-center tap offset.

    Built once per grid step from a single (1, H*W) iota; row conditions are
    expressed directly on the flat index (no div/mul), col uses one rem.
    """
    masks = {}
    for di in range(-pad, pad + 1):
        for dj in range(-pad, pad + 1):
            if di == 0 and dj == 0:
                continue
            m = None
            if di > 0:
                m = idx < (height - di) * width          # row + di < height
            elif di < 0:
                m = idx >= (-di) * width                 # row + di >= 0
            if dj > 0:
                cm = col < (width - dj)                  # col + dj < width
                m = cm if m is None else (m & cm)
            elif dj < 0:
                cm = col >= -dj                          # col + dj >= 0
                m = cm if m is None else (m & cm)
            masks[(di, dj)] = m
    return masks


def _shifted_tap(x, di, dj, width, hw, use_tpu_roll, valid_masks):
    """Shifted (and zero-masked) copy of the flattened planes for tap (di, dj).

    roll -> mask -> (caller stores) with no intermediate buffers. pltpu.roll
    keeps the shift on the XLU (vector-extended slot); jnp.roll is used only
    when H*W is not 128-aligned.
    """
    shift = di * width + dj
    amt = (-shift) % hw                                  # positive cyclic shift
    if amt == 0:
        shifted = x
    elif use_tpu_roll:
        shifted = pltpu.roll(x, shift=amt, axis=1)
    else:
        shifted = jnp.roll(x, amt, axis=1)
    if di == 0 and dj == 0:
        return shifted                                   # center tap: always valid
    return jnp.where(valid_masks[(di, dj)], shifted, jnp.zeros((), x.dtype))


# --------------------------------------------------------------------------- #
# Kernels
# --------------------------------------------------------------------------- #
def unfold_kernel(x_ref, o_ref, *, kernel_size, height, width, use_tpu_roll):
    """Main path: TBC planes -> all K*K shifted/zero-padded copies per step.

    x_ref : (TBC, H*W)
    o_ref : (TBC, K*K * H*W)   taps concatenated along lanes
    """
    hw = height * width
    pad = kernel_size // 2
    x = x_ref[...]

    idx = jax.lax.broadcasted_iota(jnp.int32, (1, hw), 1)
    col = idx % width
    valid = _valid_masks(idx, col, height, width, pad)

    for k in range(kernel_size * kernel_size):
        di = k // kernel_size - pad
        dj = k % kernel_size - pad
        # Dense, lane-aligned store (when hw % 128 == 0): lanes [k*hw, (k+1)*hw).
        o_ref[:, k * hw:(k + 1) * hw] = _shifted_tap(
            x, di, dj, width, hw, use_tpu_roll, valid)


def unfold_tap_kernel(x_ref, o_ref, *, kernel_size, height, width, use_tpu_roll):
    """Fallback path (large planes): one tap per grid step along axis 1.

    The input block index is constant across the tap axis, so Pallas keeps it
    resident (no re-fetch); only the K*K output slabs are streamed out.

    x_ref : (TBC, H*W)
    o_ref : (TBC, H*W)   slab for tap pl.program_id(1)
    """
    hw = height * width
    pad = kernel_size // 2
    tap_id = pl.program_id(1)
    x = x_ref[...]

    idx = jax.lax.broadcasted_iota(jnp.int32, (1, hw), 1)
    col = idx % width
    valid = _valid_masks(idx, col, height, width, pad)

    for k in range(kernel_size * kernel_size):
        di = k // kernel_size - pad
        dj = k % kernel_size - pad

        @pl.when(tap_id == k)
        def _(di=di, dj=dj):
            o_ref[...] = _shifted_tap(x, di, dj, width, hw, use_tpu_roll, valid)


# --------------------------------------------------------------------------- #
# Block-size / VMEM-limit selection
# --------------------------------------------------------------------------- #
def _pick_block_planes(n_planes, per_plane_bytes, itemsize):
    """Planes per grid step.

    Constraints: divides B*C; sublane-legal (dtype-aware multiple, or the full
    extent); single-buffer footprint <= _BLOCK_BUDGET_BYTES.
    Preference: >= 8 (even) grid steps, then even >= 2, then >= 2, then the
    largest fitting block.  Returns None if nothing legal fits (caller falls
    back to tap-split tiling).
    """
    sub = max(8, 32 // itemsize)                 # 8 f32, 16 bf16, 32 int8/fp8
    legal = [d for d in range(1, n_planes + 1)
             if n_planes % d == 0 and (d % sub == 0 or d == n_planes)]
    fit = [d for d in legal if d * per_plane_bytes <= _BLOCK_BUDGET_BYTES]
    if not fit:
        return None

    def steps(d):
        return n_planes // d

    for pred in (lambda d: steps(d) >= 8 and steps(d) % 2 == 0,
                 lambda d: steps(d) >= 2 and steps(d) % 2 == 0,
                 lambda d: steps(d) >= 2):
        cands = [d for d in fit if pred(d)]
        if cands:
            return max(cands)
    return max(fit)


def _vmem_limit_bytes(single_block_bytes):
    """Scoped-VMEM request: double-buffered in+out plus headroom, clamped so it
    stays under v7x's 64 MiB physical VMEM while exceeding v5e's 16 MiB default."""
    want = 2 * single_block_bytes + (16 << 20)
    return max(32 << 20, min(want, 56 << 20))


# --------------------------------------------------------------------------- #
# Wrapper
# --------------------------------------------------------------------------- #
def unfold(x: jax.Array, kernel_size: int = 3, *, _force_tap_split: bool = False):
    """Equivalent of the PyTorch Unfold module forward pass."""
    if kernel_size % 2 != 1:
        # torch's conv2d with padding=k//2 only yields H*W outputs for odd k.
        raise ValueError("unfold kernel only supports odd kernel_size")
    b, c, h, w = x.shape
    k2 = kernel_size * kernel_size
    hw = h * w
    n_planes = b * c
    itemsize = x.dtype.itemsize
    # Lane-dense stores only hold when H*W is 128-aligned; otherwise the kernel
    # is still correct but tap stores are edge-masked (perf, not correctness).
    aligned = (hw % 128 == 0)
    xr = x.reshape(n_planes, hw)

    cost = pl.CostEstimate(
        flops=0, transcendentals=0,
        bytes_accessed=(1 + k2) * n_planes * hw * itemsize)

    tbc = None if _force_tap_split else _pick_block_planes(
        n_planes, (1 + k2) * hw * itemsize, itemsize)

    if tbc is not None:
        # -------- main path: all K*K taps per grid step --------------------
        block_bytes = (1 + k2) * tbc * hw * itemsize
        out = pl.pallas_call(
            functools.partial(unfold_kernel, kernel_size=kernel_size,
                              height=h, width=w, use_tpu_roll=aligned),
            out_shape=jax.ShapeDtypeStruct((n_planes, k2 * hw), x.dtype),
            grid=(n_planes // tbc,),
            in_specs=[pl.BlockSpec((tbc, hw), lambda i: (i, 0))],
            out_specs=pl.BlockSpec((tbc, k2 * hw), lambda i: (i, 0)),
            compiler_params=pltpu.CompilerParams(
                dimension_semantics=("parallel",),
                vmem_limit_bytes=_vmem_limit_bytes(block_bytes)),
            cost_estimate=cost,
        )(xr)
    else:
        # -------- fallback: second grid axis over taps (large planes) ------
        if not aligned:
            # TODO(synk): spatial (H-row halo) tiling for huge non-128-aligned
            # planes; not needed for the supported/tested shapes.
            raise NotImplementedError(
                "plane too large for VMEM and H*W not a multiple of 128")
        tbc = _pick_block_planes(n_planes, 2 * hw * itemsize, itemsize)
        if tbc is None:
            # TODO(synk): add a third tiling level over H (with pad-row halo)
            # for planes whose single-tap block alone exceeds the VMEM budget.
            raise NotImplementedError("single plane exceeds the VMEM block budget")
        block_bytes = 2 * tbc * hw * itemsize
        out = pl.pallas_call(
            functools.partial(unfold_tap_kernel, kernel_size=kernel_size,
                              height=h, width=w, use_tpu_roll=aligned),
            out_shape=jax.ShapeDtypeStruct((n_planes, k2 * hw), x.dtype),
            grid=(n_planes // tbc, k2),
            # input block index constant across the tap axis -> fetched once
            in_specs=[pl.BlockSpec((tbc, hw), lambda i, k: (i, 0))],
            out_specs=pl.BlockSpec((tbc, hw), lambda i, k: (i, k)),
            compiler_params=pltpu.CompilerParams(
                dimension_semantics=("parallel", "arbitrary"),
                vmem_limit_bytes=_vmem_limit_bytes(block_bytes)),
            cost_estimate=cost,
        )(xr)

    # (B*C, K*K*H*W) -> (B, C*K*K, H*W): identical flat element order as the
    # torch output, so this is a contiguous view (no transpose / extra HBM pass).
    return out.reshape(b, c * k2, hw)


# --------------------------------------------------------------------------- #
# Pure-JAX reference (mirrors F.conv2d with identity-basis weights)
# --------------------------------------------------------------------------- #
def _reference_unfold(x: jax.Array, kernel_size: int = 3) -> jax.Array:
    b, c, h, w = x.shape
    p = kernel_size // 2
    xp = jnp.pad(x, ((0, 0), (0, 0), (p, p), (p, p)))
    taps = []
    for k in range(kernel_size * kernel_size):
        di = k // kernel_size
        dj = k % kernel_size
        taps.append(xp[:, :, di:di + h, dj:dj + w])
    out = jnp.stack(taps, axis=2)                 # (B, C, K*K, H, W)
    return out.reshape(b, c * kernel_size ** 2, h * w)


if __name__ == "__main__":
    key = jax.random.PRNGKey(0)
    B, C, H, W = 2, 4, 16, 16
    x = jax.random.normal(key, (B, C, H, W), dtype=jnp.float32)

    y_ref = _reference_unfold(x, kernel_size=3)

    # Main (all-taps-per-step) path.
    y = jax.block_until_ready(unfold(x, kernel_size=3))
    assert y.shape == (B, C * 9, H * W), y.shape
    assert jnp.allclose(y, y_ref, atol=1e-6, rtol=1e-6), "main path mismatch"

    # Fallback (per-tap grid axis) path, as used for planes too large for VMEM.
    y2 = jax.block_until_ready(unfold(x, kernel_size=3, _force_tap_split=True))
    assert jnp.allclose(y2, y_ref, atol=1e-6, rtol=1e-6), "tap-split path mismatch"

    print("KERNEL_OK")
</pallas_src>

<mosaic_0001>
module attributes {stable_mosaic.version = 11 : i64} {
  func.func @unfold_kernel(%arg0: i32, %arg1: memref<8x256xf32, #tpu.memory_space<vmem>>, %arg2: memref<8x2304xf32, #tpu.memory_space<vmem>>) attributes {dimension_semantics = [#tpu.dimension_semantics<parallel>], iteration_bounds = array<i64: 1>, scalar_prefetch = 0 : i64, scratch_operands = 0 : i64, tpu.core_type = #tpu.core_type<tc>, window_params = [{transform_indices = @transform_0, window_bounds = array<i64: 8, 256>}, {transform_indices = @transform_1, window_bounds = array<i64: 8, 2304>}]} {
    %c0 = arith.constant 0 : index
    %c0_0 = arith.constant 0 : index
    %0 = vector.load %arg1[%c0, %c0_0] : memref<8x256xf32, #tpu.memory_space<vmem>>, vector<8x256xf32>
    %1 = tpu.iota {dimensions = array<i32: 1>} : vector<1x256xi32>
    %c16_i32 = arith.constant 16 : i32
    %c0_i32 = arith.constant 0 : i32
    %2 = arith.cmpi eq, %c16_i32, %c0_i32 : i32
    %c1_i32 = arith.constant 1 : i32
    %3 = arith.select %2, %c1_i32, %c16_i32 : i32
    %4 = vector.broadcast %3 : i32 to vector<1x256xi32>
    %5 = arith.remsi %1, %4 : vector<1x256xi32>
    %c0_i32_1 = arith.constant 0 : i32
    %6 = vector.broadcast %c0_i32_1 : i32 to vector<1x256xi32>
    %7 = arith.cmpi ne, %5, %6 : vector<1x256xi32>
    %c0_i32_2 = arith.constant 0 : i32
    %8 = vector.broadcast %c0_i32_2 : i32 to vector<1x256xi32>
    %9 = arith.cmpi slt, %5, %8 : vector<1x256xi32>
    %c0_i32_3 = arith.constant 0 : i32
    %10 = arith.cmpi slt, %3, %c0_i32_3 : i32
    %11 = vector.broadcast %10 : i1 to vector<1x256xi1>
    %12 = vector.broadcast %11 : vector<1x256xi1> to vector<1x256xi1>
    %13 = arith.xori %9, %12 : vector<1x256xi1>
    %14 = arith.andi %13, %7 : vector<1x256xi1>
    %15 = vector.broadcast %3 : i32 to vector<1x256xi32>
    %16 = arith.addi %5, %15 : vector<1x256xi32>
    %17 = arith.select %14, %16, %5 : vector<1x256xi1>, vector<1x256xi32>
    %c16_i32_4 = arith.constant 16 : i32
    %18 = vector.broadcast %c16_i32_4 : i32 to vector<1x256xi32>
    %19 = arith.cmpi sge, %1, %18 : vector<1x256xi32>
    %c1_i32_5 = arith.constant 1 : i32
    %20 = vector.broadcast %c1_i32_5 : i32 to vector<1x256xi32>
    %21 = arith.cmpi sge, %17, %20 : vector<1x256xi32>
    %22 = arith.andi %19, %21 : vector<1x256xi1>
    %c16_i32_6 = arith.constant 16 : i32
    %23 = vector.broadcast %c16_i32_6 : i32 to vector<1x256xi32>
    %24 = arith.cmpi sge, %1, %23 : vector<1x256xi32>
    %c16_i32_7 = arith.constant 16 : i32
    %25 = vector.broadcast %c16_i32_7 : i32 to vector<1x256xi32>
    %26 = arith.cmpi sge, %1, %25 : vector<1x256xi32>
    %c15_i32 = arith.constant 15 : i32
    %27 = vector.broadcast %c15_i32 : i32 to vector<1x256xi32>
    %28 = arith.cmpi slt, %17, %27 : vector<1x256xi32>
    %29 = arith.andi %26, %28 : vector<1x256xi1>
    %c1_i32_8 = arith.constant 1 : i32
    %30 = vector.broadcast %c1_i32_8 : i32 to vector<1x256xi32>
    %31 = arith.cmpi sge, %17, %30 : vector<1x256xi32>
    %c15_i32_9 = arith.constant 15 : i32
    %32 = vector.broadcast %c15_i32_9 : i32 to vector<1x256xi32>
    %33 = arith.cmpi slt, %17, %32 : vector<1x256xi32>
    %c240_i32 = arith.constant 240 : i32
    %34 = vector.broadcast %c240_i32 : i32 to vector<1x256xi32>
    %35 = arith.cmpi slt, %1, %34 : vector<1x256xi32>
    %c1_i32_10 = arith.constant 1 : i32
    %36 = vector.broadcast %c1_i32_10 : i32 to vector<1x256xi32>
    %37 = arith.cmpi sge, %17, %36 : vector<1x256xi32>
    %38 = arith.andi %35, %37 : vector<1x256xi1>
    %c240_i32_11 = arith.constant 240 : i32
    %39 = vector.broadcast %c240_i32_11 : i32 to vector<1x256xi32>
    %40 = arith.cmpi slt, %1, %39 : vector<1x256xi32>
    %c240_i32_12 = arith.constant 240 : i32
    %41 = vector.broadcast %c240_i32_12 : i32 to vector<1x256xi32>
    %42 = arith.cmpi slt, %1, %41 : vector<1x256xi32>
    %c15_i32_13 = arith.constant 15 : i32
    %43 = vector.broadcast %c15_i32_13 : i32 to vector<1x256xi32>
    %44 = arith.cmpi slt, %17, %43 : vector<1x256xi32>
    %45 = arith.andi %42, %44 : vector<1x256xi1>
    %c17_i32 = arith.constant 17 : i32
    %46 = tpu.dynamic_rotate %0 by %c17_i32 dim 1 : vector<8x256xf32>, i32 -> vector<8x256xf32>
    %cst = arith.constant 0.000000e+00 : f32
    %47 = vector.shape_cast %22 : vector<1x256xi1> to vector<1x256xi1>
    %48 = vector.broadcast %47 : vector<1x256xi1> to vector<8x256xi1>
    %49 = vector.broadcast %cst : f32 to vector<8x256xf32>
    %50 = arith.select %48, %46, %49 : vector<8x256xi1>, vector<8x256xf32>
    %c0_14 = arith.constant 0 : index
    %c0_15 = arith.constant 0 : index
    %51 = vector.load %arg2[%c0_14, %c0_15] : memref<8x2304xf32, #tpu.memory_space<vmem>>, vector<8x256xf32>
    tpu.vector_store %arg2[%c0_14, %c0_15], %50 {strides = array<i32>} : memref<8x2304xf32, #tpu.memory_space<vmem>>, vector<8x256xf32>,
    %c16_i32_16 = arith.constant 16 : i32
    %52 = tpu.dynamic_rotate %0 by %c16_i32_16 dim 1 : vector<8x256xf32>, i32 -> vector<8x256xf32>
    %cst_17 = arith.constant 0.000000e+00 : f32
    %53 = vector.shape_cast %24 : vector<1x256xi1> to vector<1x256xi1>
    %54 = vector.broadcast %53 : vector<1x256xi1> to vector<8x256xi1>
    %55 = vector.broadcast %cst_17 : f32 to vector<8x256xf32>
    %56 = arith.select %54, %52, %55 : vector<8x256xi1>, vector<8x256xf32>
    %c0_18 = arith.constant 0 : index
    %c256 = arith.constant 256 : index
    %57 = vector.load %arg2[%c0_18, %c256] : memref<8x2304xf32, #tpu.memory_space<vmem>>, vector<8x256xf32>
    tpu.vector_store %arg2[%c0_18, %c256], %56 {strides = array<i32>} : memref<8x2304xf32, #tpu.memory_space<vmem>>, vector<8x256xf32>,
    %c15_i32_19 = arith.constant 15 : i32
    %58 = tpu.dynamic_rotate %0 by %c15_i32_19 dim 1 : vector<8x256xf32>, i32 -> vector<8x256xf32>
    %cst_20 = arith.constant 0.000000e+00 : f32
    %59 = vector.shape_cast %29 : vector<1x256xi1> to vector<1x256xi1>
    %60 = vector.broadcast %59 : vector<1x256xi1> to vector<8x256xi1>
    %61 = vector.broadcast %cst_20 : f32 to vector<8x256xf32>
    %62 = arith.select %60, %58, %61 : vector<8x256xi1>, vector<8x256xf32>
    %c0_21 = arith.constant 0 : index
    %c512 = arith.constant 512 : index
    %63 = vector.load %arg2[%c0_21, %c512] : memref<8x2304xf32, #tpu.memory_space<vmem>>, vector<8x256xf32>
    tpu.vector_store %arg2[%c0_21, %c512], %62 {strides = array<i32>} : memref<8x2304xf32, #tpu.memory_space<vmem>>, vector<8x256xf32>,
    %c1_i32_22 = arith.constant 1 : i32
    %64 = tpu.dynamic_rotate %0 by %c1_i32_22 dim 1 : vector<8x256xf32>, i32 -> vector<8x256xf32>
    %cst_23 = arith.constant 0.000000e+00 : f32
    %65 = vector.shape_cast %31 : vector<1x256xi1> to vector<1x256xi1>
    %66 = vector.broadcast %65 : vector<1x256xi1> to vector<8x256xi1>
    %67 = vector.broadcast %cst_23 : f32 to vector<8x256xf32>
    %68 = arith.select %66, %64, %67 : vector<8x256xi1>, vector<8x256xf32>
    %c0_24 = arith.constant 0 : index
    %c768 = arith.constant 768 : index
    %69 = vector.load %arg2[%c0_24, %c768] : memref<8x2304xf32, #tpu.memory_space<vmem>>, vector<8x256xf32>
    tpu.vector_store %arg2[%c0_24, %c768], %68 {strides = array<i32>} : memref<8x2304xf32, #tpu.memory_space<vmem>>, vector<8x256xf32>,
    %c0_25 = arith.constant 0 : index
    %c1024 = arith.constant 1024 : index
    %70 = vector.load %arg2[%c0_25, %c1024] : memref<8x2304xf32, #tpu.memory_space<vmem>>, vector<8x256xf32>
    tpu.vector_store %arg2[%c0_25, %c1024], %0 {strides = array<i32>} : memref<8x2304xf32, #tpu.memory_space<vmem>>, vector<8x256xf32>,
    %c255_i32 = arith.constant 255 : i32
    %71 = tpu.dynamic_rotate %0 by %c255_i32 dim 1 : vector<8x256xf32>, i32 -> vector<8x256xf32>
    %cst_26 = arith.constant 0.000000e+00 : f32
    %72 = vector.shape_cast %33 : vector<1x256xi1> to vector<1x256xi1>
    %73 = vector.broadcast %72 : vector<1x256xi1> to vector<8x256xi1>
    %74 = vector.broadcast %cst_26 : f32 to vector<8x256xf32>
    %75 = arith.select %73, %71, %74 : vector<8x256xi1>, vector<8x256xf32>
    %c0_27 = arith.constant 0 : index
    %c1280 = arith.constant 1280 : index
    %76 = vector.load %arg2[%c0_27, %c1280] : memref<8x2304xf32, #tpu.memory_space<vmem>>, vector<8x256xf32>
    tpu.vector_store %arg2[%c0_27, %c1280], %75 {strides = array<i32>} : memref<8x2304xf32, #tpu.memory_space<vmem>>, vector<8x256xf32>,
    %c241_i32 = arith.constant 241 : i32
    %77 = tpu.dynamic_rotate %0 by %c241_i32 dim 1 : vector<8x256xf32>, i32 -> vector<8x256xf32>
    %cst_28 = arith.constant 0.000000e+00 : f32
    %78 = vector.shape_cast %38 : vector<1x256xi1> to vector<1x256xi1>
    %79 = vector.broadcast %78 : vector<1x256xi1> to vector<8x256xi1>
    %80 = vector.broadcast %cst_28 : f32 to vector<8x256xf32>
    %81 = arith.select %79, %77, %80 : vector<8x256xi1>, vector<8x256xf32>
    %c0_29 = arith.constant 0 : index
    %c1536 = arith.constant 1536 : index
    %82 = vector.load %arg2[%c0_29, %c1536] : memref<8x2304xf32, #tpu.memory_space<vmem>>, vector<8x256xf32>
    tpu.vector_store %arg2[%c0_29, %c1536], %81 {strides = array<i32>} : memref<8x2304xf32, #tpu.memory_space<vmem>>, vector<8x256xf32>,
    %c240_i32_30 = arith.constant 240 : i32
    %83 = tpu.dynamic_rotate %0 by %c240_i32_30 dim 1 : vector<8x256xf32>, i32 -> vector<8x256xf32>
    %cst_31 = arith.constant 0.000000e+00 : f32
    %84 = vector.shape_cast %40 : vector<1x256xi1> to vector<1x256xi1>
    %85 = vector.broadcast %84 : vector<1x256xi1> to vector<8x256xi1>
    %86 = vector.broadcast %cst_31 : f32 to vector<8x256xf32>
    %87 = arith.select %85, %83, %86 : vector<8x256xi1>, vector<8x256xf32>
    %c0_32 = arith.constant 0 : index
    %c1792 = arith.constant 1792 : index
    %88 = vector.load %arg2[%c0_32, %c1792] : memref<8x2304xf32, #tpu.memory_space<vmem>>, vector<8x256xf32>
    tpu.vector_store %arg2[%c0_32, %c1792], %87 {strides = array<i32>} : memref<8x2304xf32, #tpu.memory_space<vmem>>, vector<8x256xf32>,
    %c239_i32 = arith.constant 239 : i32
    %89 = tpu.dynamic_rotate %0 by %c239_i32 dim 1 : vector<8x256xf32>, i32 -> vector<8x256xf32>
    %cst_33 = arith.constant 0.000000e+00 : f32
    %90 = vector.shape_cast %45 : vector<1x256xi1> to vector<1x256xi1>
    %91 = vector.broadcast %90 : vector<1x256xi1> to vector<8x256xi1>
    %92 = vector.broadcast %cst_33 : f32 to vector<8x256xf32>
    %93 = arith.select %91, %89, %92 : vector<8x256xi1>, vector<8x256xf32>
    %c0_34 = arith.constant 0 : index
    %c2048 = arith.constant 2048 : index
    %94 = vector.load %arg2[%c0_34, %c2048] : memref<8x2304xf32, #tpu.memory_space<vmem>>, vector<8x256xf32>
    tpu.vector_store %arg2[%c0_34, %c2048], %93 {strides = array<i32>} : memref<8x2304xf32, #tpu.memory_space<vmem>>, vector<8x256xf32>,
    return
  }
  func.func @transform_0(%arg0: i32) -> (i32, i32) {
    %c0_i32 = arith.constant 0 : i32
    %c0_i32_0 = arith.constant 0 : i32
    return %arg0, %c0_i32 : i32, i32
  }
  func.func @transform_1(%arg0: i32) -> (i32, i32) {
    %c0_i32 = arith.constant 0 : i32
    %c0_i32_0 = arith.constant 0 : i32
    return %arg0, %c0_i32 : i32, i32
  }
}

</mosaic_0001>

<bundles_post_ra>
// kernel: tpu_custom_call.1
= control target key start
LH: loop header
LB: loop body
LE: loop exit
PB: predicated region body
PF: predicated region fallthrough
CT: control target
= control target key end

     0   :  { %6 = vsyncpa [#allocation3], 0  ;;  %s374_s0 = inlined_call_operand.hbm [shape: f32[8,256], index: 0, kind: input, shape index: {}]   ;;  %s375_s1 = inlined_call_operand.hbm [shape: f32[8,2304], index: 1, kind: output, shape index: {}]  }
   0x1   :  { %7 = vsyncpa [#allocation4], 0  ;;  %s261_s6 = smov [#allocation2]   ;;  %s213_s10 = scalar_lea.hbm %s374_s0, 256 }
   0x2   :  { %s14_s7 = sshll.u32 %s261_s6, 4  ;;  %p214_p0 = scmp.ne.s32.totalorder %s374_s0, %s213_s10  ;;  %s15_s7 = int_to_ptr.vmem [resolvable:$true] %s14_s7 }
   0x3   :  { %p217_p1 = scmp.lt.u32.totalorder %s213_s10, %s374_s0 }
   0x5   :  { %p219_p2 = pnand %p217_p1, %p214_p0 }
   0x7   :  { %222 = shalt.err (!%p219_p2)
}
   0x8   :  { %s223_s15 = scalar_lea.vmem %s15_s7, 256  ;;  %p228_p4 = scmp.lt.s32.totalorder %s15_s7, %s15_s7 }
   0x9   :  { %p224_p3 = scmp.ne.s32.totalorder %s15_s7, %s223_s15  ;;  %p229_p5 = scmp.lt.s32.totalorder %s223_s15, %s223_s15 }
   0xb   :  { %p230_p6 = por %p229_p5, %p228_p4 }
   0xd   :  { %p231_p7 = pnand %p230_p6, %p224_p3 }
   0xf   :  { %234 = shalt.err (!%p231_p7)
}
  0x10   :  { %17 = dma.hbm_to_vmem [thread:$0]  %s374_s0, 256, %s15_s7, [#allocation3]  }
  0x11   :  { %257 = dma.done.wait [#allocation3], 256  }
  0x12   :  { %258 = vsyncadd [#allocation3], 4294967040  ;;  %v21_v0 = vld [vmem:[#allocation2] sm:$0xff]  ;;  %v22_v1 = vld [vmem:[#allocation2 + $0x8] sm:$0xff]  ;;  %s262_s18 = smov 16   ;;  %s263_s19 = smov 17   ;;  %v23_v2 = vlaneseq }
  0x13   :  { %81 = vrot.lane.b32.xlu1 %v21_v0, %s262_s18  ;;  %126 = vst [vmem:[#allocation5 + $0x40] sm:$0xff] %v21_v0  ;;  %66 = vrot.lane.b32.xlu0 %v21_v0, %s263_s19  ;;  %127 = vst [vmem:[#allocation5 + $0x48] sm:$0xff] %v22_v1  ;;  %s264_s20 = smov 15   ;;  %s265_s21 = smov 1  }
  0x14   :  { %s266_s22 = smov 127   ;;  %s267_s0 = smov 113   ;;  %v293_v3 = vand.u32 127, %v23_v2 }
  0x15   :  { %s268_s23 = smov 112   ;;  %s269_s24 = smov 111  }
  0x16   :  { %v296_v4 = vadd.s32 128, %v293_v3  ;;  %v30_v5 = vand.u32 15, %v293_v3  ;;  %vm50_vm0 = vcmp.ge.s32.totalorder %v293_v3, 16  ;;  %vm85_vm2 = vcmp.lt.s32.totalorder %v293_v3, 16  ;;  %s270_s25 = smov [#allocation5]  }
  0x17   :  { %83 = vrot.lane.b32.xlu1 %v22_v1, %s262_s18  ;;  %68 = vrot.lane.b32.xlu0 %v22_v1, %s263_s19  ;;  %vm70_vm3 = vcmp.lt.s32.totalorder %v293_v3, 17  ;;  %vm100_vm7 = vcmp.lt.s32.totalorder %v293_v3, 15  ;;  %vm115_vm10 = vcmp.lt.s32.totalorder %v293_v3, 1  ;;  %vm132_vm11 = vcmp.lt.s32.totalorder %v293_v3, 127  ;;  %s194_s26 = sshll.u32 %s270_s25, 4  ;;  %s195_s26 = int_to_ptr.vmem [resolvable:$true] %s194_s26 }
  0x18   :  { %v37_v6 = vand.u32 15, %v296_v4  ;;  %vm301_vm1 = vcmp.ge.s32.totalorder %v30_v5, 1  ;;  %vm315_vm6 = vcmp.lt.s32.totalorder %v30_v5, 15  ;;  %vm61_vm12 = vcmp.lt.s32.totalorder %v296_v4, 240  ;;  %s235_s27 = scalar_lea.vmem %s195_s26, 2304  ;;  %p240_p9 = scmp.lt.s32.totalorder %s195_s26, %s195_s26 }
  0x19   :  { %vm54_vm5 = vmand %vm50_vm0, %vm301_vm1  ;;  %vm147_vm13 = vcmp.lt.s32.totalorder %v293_v3, 113  ;;  %vm162_vm15 = vcmp.lt.s32.totalorder %v293_v3, 112  ;;  %p236_p8 = scmp.ne.s32.totalorder %s195_s26, %s235_s27  ;;  %p241_p10 = scmp.lt.s32.totalorder %s235_s27, %s235_s27 }
  0x1a   :  { %vm307_vm4 = vcmp.ge.s32.totalorder %v37_v6, 1  ;;  %vm324_vm8 = vcmp.lt.s32.totalorder %v37_v6, 15  ;;  %vm58_vm9 = vmand %vm50_vm0, %vm315_vm6 }
  0x1b   :  { %98 = vrot.lane.b32.xlu1 %v22_v1, %s264_s20  ;;  %96 = vrot.lane.b32.xlu0 %v21_v0, %s264_s20  ;;  %vm63_vm14 = vmand %vm61_vm12, %vm307_vm4  ;;  %p242_p11 = por %p241_p10, %p240_p9 }
  0x1d   :  { %p243_p12 = pnand %p242_p11, %p236_p8 }
  0x1f   :  { %113 = vrot.lane.b32.xlu1 %v22_v1, %s265_s21  ;;  %111 = vrot.lane.b32.xlu0 %v21_v0, %s265_s21 }
  0x23   :  { %130 = vrot.lane.b32.xlu1 %v22_v1, %s266_s22  ;;  %128 = vrot.lane.b32.xlu0 %v21_v0, %s266_s22 }
  0x27   :  { %145 = vrot.lane.b32.xlu1 %v22_v1, %s267_s0  ;;  %143 = vrot.lane.b32.xlu0 %v21_v0, %s267_s0 }
  0x2b   :  { %160 = vrot.lane.b32.xlu1 %v22_v1, %s268_s23  ;;  %158 = vrot.lane.b32.xlu0 %v21_v0, %s268_s23 }
  0x2f   :  { %175 = vrot.lane.b32.xlu1 %v22_v1, %s269_s24  ;;  %173 = vrot.lane.b32.xlu0 %v21_v0, %s269_s24 }
  0x85   :  { %v82_v7 = vpop.permute.xlu1 %81  ;;  %v67_v8 = vpop.permute.xlu0 %66 }
  0x89   :  { %v84_v11 = vpop.permute.xlu1 %83  ;;  %v69_v12 = vpop.permute.xlu0 %68 }
  0x8a   :  { %v86_v14 = vsel %vm85_vm2, %v82_v7, %v84_v11  ;;  %v87_v15 = vsel %vm85_vm2, %v84_v11, %v82_v7  ;;  %v71_v16 = vsel %vm70_vm3, %v67_v8, %v69_v12  ;;  %v72_v17 = vsel %vm70_vm3, %v69_v12, %v67_v8 }
  0x8b   :  { %v92_v18 = vsel %vm50_vm0, %v87_v15, 0.0  ;;  %95 = vst [vmem:[#allocation5 + $0x18] sm:$0xff] %v86_v14  ;;  %v77_v19 = vsel %vm54_vm5, %v72_v17, 0.0  ;;  %v78_v20 = vsel %vm307_vm4, %v71_v16, 0.0  ;;  %vm177_vm0 = vcmp.lt.s32.totalorder %v293_v3, 111 }
  0x8c   :  { %94 = vst [vmem:[#allocation5 + $0x10] sm:$0xff] %v92_v18  ;;  %79 = vst [vmem:[#allocation5] sm:$0xff] %v77_v19 }
  0x8d   :  { %80 = vst [vmem:[#allocation5 + $0x8] sm:$0xff] %v78_v20  ;;  %v99_v22 = vpop.permute.xlu1 %98  ;;  %v97_v23 = vpop.permute.xlu0 %96 }
  0x8e   :  { %v101_v24 = vsel %vm100_vm7, %v97_v23, %v99_v22  ;;  %v102_v25 = vsel %vm100_vm7, %v99_v22, %v97_v23 }
  0x8f   :  { %v107_v26 = vsel %vm58_vm9, %v102_v25, 0.0  ;;  %v108_v27 = vsel %vm324_vm8, %v101_v24, 0.0 }
  0x90   :  { %109 = vst [vmem:[#allocation5 + $0x20] sm:$0xff] %v107_v26  ;;  %110 = vst [vmem:[#allocation5 + $0x28] sm:$0xff] %v108_v27 }
  0x91   :  { %v114_v28 = vpop.permute.xlu1 %113  ;;  %v112_v29 = vpop.permute.xlu0 %111 }
  0x92   :  { %v116_v30 = vsel %vm115_vm10, %v112_v29, %v114_v28  ;;  %v117_v31 = vsel %vm115_vm10, %v114_v28, %v112_v29 }
  0x93   :  { %v122_v32 = vsel %vm301_vm1, %v117_v31, 0.0  ;;  %v123_v33 = vsel %vm307_vm4, %v116_v30, 0.0 }
  0x94   :  { %124 = vst [vmem:[#allocation5 + $0x30] sm:$0xff] %v122_v32  ;;  %125 = vst [vmem:[#allocation5 + $0x38] sm:$0xff] %v123_v33 }
  0x95   :  { %v131_v34 = vpop.permute.xlu1 %130  ;;  %v129_v35 = vpop.permute.xlu0 %128 }
  0x96   :  { %v133_v36 = vsel %vm132_vm11, %v129_v35, %v131_v34  ;;  %v134_v37 = vsel %vm132_vm11, %v131_v34, %v129_v35 }
  0x97   :  { %v139_v38 = vsel %vm315_vm6, %v133_v36, 0.0  ;;  %v140_v39 = vsel %vm324_vm8, %v134_v37, 0.0 }
  0x98   :  { %141 = vst [vmem:[#allocation5 + $0x50] sm:$0xff] %v139_v38  ;;  %142 = vst [vmem:[#allocation5 + $0x58] sm:$0xff] %v140_v39 }
  0x99   :  { %v146_v40 = vpop.permute.xlu1 %145  ;;  %v144_v41 = vpop.permute.xlu0 %143 }
  0x9a   :  { %v148_v42 = vsel %vm147_vm13, %v144_v41, %v146_v40  ;;  %v149_v43 = vsel %vm147_vm13, %v146_v40, %v144_v41 }
  0x9b   :  { %v154_v44 = vsel %vm301_vm1, %v148_v42, 0.0  ;;  %v155_v45 = vsel %vm63_vm14, %v149_v43, 0.0  ;;  %vm65_vm1 = vmand %vm61_vm12, %vm324_vm8 }
  0x9c   :  { %156 = vst [vmem:[#allocation5 + $0x60] sm:$0xff] %v154_v44  ;;  %157 = vst [vmem:[#allocation5 + $0x68] sm:$0xff] %v155_v45 }
  0x9d   :  { %v161_v46 = vpop.permute.xlu1 %160  ;;  %v159_v47 = vpop.permute.xlu0 %158 }
  0x9e   :  { %v163_v48 = vsel %vm162_vm15, %v159_v47, %v161_v46  ;;  %v164_v49 = vsel %vm162_vm15, %v161_v46, %v159_v47 }
  0x9f   :  { %v170_v50 = vsel %vm61_vm12, %v164_v49, 0.0  ;;  %171 = vst [vmem:[#allocation5 + $0x70] sm:$0xff] %v163_v48 }
  0xa0   :  { %172 = vst [vmem:[#allocation5 + $0x78] sm:$0xff] %v170_v50 }
  0xa1   :  { %v176_v51 = vpop.permute.xlu1 %175  ;;  %v174_v52 = vpop.permute.xlu0 %173 }
  0xa2   :  { %v178_v53 = vsel %vm177_vm0, %v174_v52, %v176_v51  ;;  %v179_v54 = vsel %vm177_vm0, %v176_v51, %v174_v52 }
  0xa3   :  { %v184_v55 = vsel %vm315_vm6, %v178_v53, 0.0  ;;  %v185_v56 = vsel %vm65_vm1, %v179_v54, 0.0 }
  0xa4   :  { %186 = vst [vmem:[#allocation5 + $0x80] sm:$0xff] %v184_v55  ;;  %187 = vst [vmem:[#allocation5 + $0x88] sm:$0xff] %v185_v56 }
  0xa5   :  { %246 = shalt.err (!%p243_p12)
}
  0xa6   :  { %s247_s30 = scalar_lea.hbm %s375_s1, 2304 }
  0xa7   :  { %p248_p13 = scmp.ne.s32.totalorder %s375_s1, %s247_s30  ;;  %p251_p0 = scmp.lt.u32.totalorder %s247_s30, %s375_s1 }
  0xa9   :  { %p253_p1 = pnand %p251_p0, %p248_p13 }
  0xab   :  { %256 = shalt.err (!%p253_p1)
}
  0xac   :  { %197 = dma.vmem_to_hbm [thread:$0]  %s195_s26, 2304, %s375_s1, [#allocation4]  }
  0xad   :  { %259 = dma.done.wait [#allocation4], 2304  }
  0xae   :  { %260 = vsyncadd [#allocation4], 4294964992 }
  0xaf   :  { %201 = vsyncpa [#allocation3], 1 }
  0xb0   :  { %202 = vsyncpa [#allocation4], 1 }

</bundles_post_ra>
